<compile_context>
chip_gen: v6e
topology: v6e:2x2x1
jax: 0.10.0
libtpu: 0.0.40
codegen_flags: <defaults>
</compile_context>

<pallas_src>
import jax
import jax.numpy as jnp
from jax.experimental import pallas as pl
from jax.experimental.pallas import tpu as pltpu

IN_FEATURES = 28 * 28          # 784
HIDDEN = 128
OUT_FEATURES = 10
OUT_PADDED = 128               # lane-dense output width
SUBLANE = 16                   # row granularity (covers bf16 sublane packing)
DEFAULT_TB = 2048              # batch tile (rows per grid step)
VMEM_LIMIT_BYTES = 32 * 1024 * 1024


def simplenet_kernel(x_ref, w1_ref, b1_ref, w2_ref, b2_ref, out_ref):
    # x_ref:  (TB, 784) f32      w1_ref: (784, 128) bf16   b1_ref: (1, 128) f32
    # w2_ref: (128, 128) bf16    b2_ref: (1, 128) f32      out_ref: (TB, 128) bf16
    # In-kernel f32 -> bf16 cast of the activations (VPU; avoids a separate
    # wrapper-side convert that would cost an extra HBM round trip).
    x_bf16 = x_ref[...].astype(jnp.bfloat16)
    # fc1 (bf16 MXU, f32 accumulate) + bias + ReLU in f32
    h = jnp.dot(x_bf16, w1_ref[...], preferred_element_type=jnp.float32)
    h = jnp.maximum(h + b1_ref[...], 0.0)
    # fc2 (bf16 MXU, f32 accumulate) + bias; lane-dense 128-wide bf16 store
    out = jnp.dot(h.astype(jnp.bfloat16), w2_ref[...],
                  preferred_element_type=jnp.float32)
    out_ref[...] = (out + b2_ref[...]).astype(jnp.bfloat16)


def simplenet_forward(x, w1, b1, w2, b2, *, tb=DEFAULT_TB):
    """x: (B, 1, 28, 28) or (B, 784) float32 -> logits (B, 10) bfloat16."""
    B = x.shape[0]
    x2d = x.reshape(B, IN_FEATURES)          # stays f32; cast happens in-kernel

    # Pad only to the 16-row sublane multiple (cheap).  Partial final tiles are
    # edge-masked by Pallas; batch rows are independent so padding-region
    # garbage never pollutes valid rows and is sliced off below.
    padded_b = pl.cdiv(B, SUBLANE) * SUBLANE
    if padded_b != B:
        x2d = jnp.pad(x2d, ((0, padded_b - B), (0, 0)))

    tile_b = min(tb, padded_b)
    # Keep >= 2 grid steps when the batch allows so v7x megacore gets work on
    # both TensorCores (no-op on single-TC v5e/v6e).
    if padded_b >= 2 * SUBLANE:
        half = pl.cdiv(pl.cdiv(padded_b, 2), SUBLANE) * SUBLANE
        tile_b = min(tile_b, half)
    grid = (pl.cdiv(padded_b, tile_b),)

    # Weights: (in, out) layout, bf16 for the MXU; fc2 padded to 128 lanes.
    w1b = w1.astype(jnp.bfloat16)
    w2b = jnp.pad(w2.astype(jnp.bfloat16),
                  ((0, 0), (0, OUT_PADDED - OUT_FEATURES)))
    b1_2d = b1.reshape(1, HIDDEN).astype(jnp.float32)
    b2_2d = jnp.pad(b2.reshape(1, OUT_FEATURES).astype(jnp.float32),
                    ((0, 0), (0, OUT_PADDED - OUT_FEATURES)))

    cost = pl.CostEstimate(
        flops=2 * padded_b * (IN_FEATURES * HIDDEN + HIDDEN * OUT_PADDED),
        transcendentals=0,
        bytes_accessed=(padded_b * IN_FEATURES * 4        # x (f32)
                        + padded_b * OUT_PADDED * 2       # out (bf16)
                        + IN_FEATURES * HIDDEN * 2        # w1 (bf16)
                        + HIDDEN * OUT_PADDED * 2         # w2 (bf16)
                        + HIDDEN * 4 + OUT_PADDED * 4),   # biases (f32)
    )

    out_padded = pl.pallas_call(
        simplenet_kernel,
        out_shape=jax.ShapeDtypeStruct((padded_b, OUT_PADDED), jnp.bfloat16),
        grid_spec=pltpu.PrefetchScalarGridSpec(
            num_scalar_prefetch=0,
            grid=grid,
            in_specs=[
                pl.BlockSpec((tile_b, IN_FEATURES), lambda i: (i, 0)),
                # Weights/biases: constant index_map -> stay resident in VMEM.
                pl.BlockSpec((IN_FEATURES, HIDDEN), lambda i: (0, 0)),
                pl.BlockSpec((1, HIDDEN), lambda i: (0, 0)),
                pl.BlockSpec((HIDDEN, OUT_PADDED), lambda i: (0, 0)),
                pl.BlockSpec((1, OUT_PADDED), lambda i: (0, 0)),
            ],
            out_specs=pl.BlockSpec((tile_b, OUT_PADDED), lambda i: (i, 0)),
        ),
        compiler_params=pltpu.CompilerParams(
            dimension_semantics=("parallel",),
            vmem_limit_bytes=VMEM_LIMIT_BYTES,
        ),
        cost_estimate=cost,
    )(x2d, w1b, b1_2d, w2b, b2_2d)

    # Drop batch padding and the lane padding of fc2.  (Downstream consumers
    # that can take the zero-padded 128-wide slab directly should do so and
    # skip this slice.)
    return out_padded[:B, :OUT_FEATURES]


def init_params(key):
    # Deterministic init mimicking nn.Linear defaults: U(-1/sqrt(fan_in), 1/sqrt(fan_in)).
    k1, k2, k3, k4 = jax.random.split(key, 4)
    lim1 = 1.0 / jnp.sqrt(float(IN_FEATURES))
    lim2 = 1.0 / jnp.sqrt(float(HIDDEN))
    w1 = jax.random.uniform(k1, (IN_FEATURES, HIDDEN), jnp.float32, -lim1, lim1)
    b1 = jax.random.uniform(k2, (HIDDEN,), jnp.float32, -lim1, lim1)
    w2 = jax.random.uniform(k3, (HIDDEN, OUT_FEATURES), jnp.float32, -lim2, lim2)
    b2 = jax.random.uniform(k4, (OUT_FEATURES,), jnp.float32, -lim2, lim2)
    return w1, b1, w2, b2


if __name__ == "__main__":
    key = jax.random.PRNGKey(0)
    kx, kp = jax.random.split(key)
    # Small batch of MNIST-shaped inputs (NCHW).  (Real workloads should use
    # batch >= 128 so batch tiles fill the MXU; B=2 is just a smoke test.)
    B = 2
    x = jax.random.normal(kx, (B, 1, 28, 28), jnp.float32)
    w1, b1, w2, b2 = init_params(kp)

    logits = simplenet_forward(x, w1, b1, w2, b2)
    jax.block_until_ready(logits)
    assert logits.shape == (B, OUT_FEATURES)

    logits_f32 = logits.astype(jnp.float32)

    # Reference with the same bf16-in / f32-accumulate numerics as the kernel.
    xb = x.reshape(B, IN_FEATURES).astype(jnp.bfloat16)
    h_ref = jnp.maximum(
        jnp.dot(xb, w1.astype(jnp.bfloat16),
                preferred_element_type=jnp.float32) + b1, 0.0)
    ref = jnp.dot(h_ref.astype(jnp.bfloat16), w2.astype(jnp.bfloat16),
                  preferred_element_type=jnp.float32) + b2
    assert jnp.allclose(logits_f32, ref, atol=2e-2, rtol=2e-2), (
        jnp.max(jnp.abs(logits_f32 - ref)))

    # Sanity vs full-f32 math (looser tolerance due to bf16 inputs/output).
    ref_f32 = jnp.maximum(x.reshape(B, IN_FEATURES) @ w1 + b1, 0.0) @ w2 + b2
    assert jnp.allclose(logits_f32, ref_f32, atol=7e-2, rtol=7e-2)

    print("KERNEL_OK")
</pallas_src>

<mosaic_0001>
module attributes {stable_mosaic.version = 11 : i64} {
  func.func @simplenet_kernel(%arg0: i32, %arg1: memref<16x784xf32, #tpu.memory_space<vmem>>, %arg2: memref<784x128xbf16, #tpu.memory_space<vmem>>, %arg3: memref<1x128xf32, #tpu.memory_space<vmem>>, %arg4: memref<128x128xbf16, #tpu.memory_space<vmem>>, %arg5: memref<1x128xf32, #tpu.memory_space<vmem>>, %arg6: memref<16x128xbf16, #tpu.memory_space<vmem>>) attributes {dimension_semantics = [#tpu.dimension_semantics<parallel>], iteration_bounds = array<i64: 1>, scalar_prefetch = 0 : i64, scratch_operands = 0 : i64, tpu.core_type = #tpu.core_type<tc>, window_params = [{transform_indices = @transform_0, window_bounds = array<i64: 16, 784>}, {pipeline_mode = #tpu.pipeline_mode<synchronous>, transform_indices = @transform_1, window_bounds = array<i64: 784, 128>}, {pipeline_mode = #tpu.pipeline_mode<synchronous>, transform_indices = @transform_2, window_bounds = array<i64: 1, 128>}, {pipeline_mode = #tpu.pipeline_mode<synchronous>, transform_indices = @transform_3, window_bounds = array<i64: 128, 128>}, {pipeline_mode = #tpu.pipeline_mode<synchronous>, transform_indices = @transform_4, window_bounds = array<i64: 1, 128>}, {transform_indices = @transform_5, window_bounds = array<i64: 16, 128>}]} {
    %c0 = arith.constant 0 : index
    %c0_0 = arith.constant 0 : index
    %0 = vector.load %arg1[%c0, %c0_0] : memref<16x784xf32, #tpu.memory_space<vmem>>, vector<16x784xf32>
    %1 = arith.truncf %0 : vector<16x784xf32> to vector<16x784xbf16>
    %c0_1 = arith.constant 0 : index
    %c0_2 = arith.constant 0 : index
    %2 = vector.load %arg2[%c0_1, %c0_2] : memref<784x128xbf16, #tpu.memory_space<vmem>>, vector<784x128xbf16>
    %cst = arith.constant dense<0.000000e+00> : vector<16x128xf32>
    %3 = tpu.matmul %1, %2, %cst {dimension_numbers = #tpu.dot_dimension_numbers<[1], [0], [0], [1], [0, 0, 1, 1], [], []>} : vector<16x784xbf16>, vector<784x128xbf16>, vector<16x128xf32> -> vector<16x128xf32>
    %c0_3 = arith.constant 0 : index
    %c0_4 = arith.constant 0 : index
    %4 = vector.load %arg3[%c0_3, %c0_4] : memref<1x128xf32, #tpu.memory_space<vmem>>, vector<1x128xf32>
    %5 = vector.broadcast %4 : vector<1x128xf32> to vector<16x128xf32>
    %6 = arith.addf %3, %5 : vector<16x128xf32>
    %cst_5 = arith.constant 0.000000e+00 : f32
    %7 = vector.broadcast %cst_5 : f32 to vector<16x128xf32>
    %8 = arith.maximumf %6, %7 : vector<16x128xf32>
    %9 = arith.truncf %8 : vector<16x128xf32> to vector<16x128xbf16>
    %c0_6 = arith.constant 0 : index
    %c0_7 = arith.constant 0 : index
    %10 = vector.load %arg4[%c0_6, %c0_7] : memref<128x128xbf16, #tpu.memory_space<vmem>>, vector<128x128xbf16>
    %cst_8 = arith.constant dense<0.000000e+00> : vector<16x128xf32>
    %11 = tpu.matmul %9, %10, %cst_8 {dimension_numbers = #tpu.dot_dimension_numbers<[1], [0], [0], [1], [0, 0, 1, 1], [], []>} : vector<16x128xbf16>, vector<128x128xbf16>, vector<16x128xf32> -> vector<16x128xf32>
    %c0_9 = arith.constant 0 : index
    %c0_10 = arith.constant 0 : index
    %12 = vector.load %arg5[%c0_9, %c0_10] : memref<1x128xf32, #tpu.memory_space<vmem>>, vector<1x128xf32>
    %13 = vector.broadcast %12 : vector<1x128xf32> to vector<16x128xf32>
    %14 = arith.addf %11, %13 : vector<16x128xf32>
    %15 = arith.truncf %14 : vector<16x128xf32> to vector<16x128xbf16>
    %c0_11 = arith.constant 0 : index
    %c0_12 = arith.constant 0 : index
    %16 = vector.load %arg6[%c0_11, %c0_12] : memref<16x128xbf16, #tpu.memory_space<vmem>>, vector<16x128xbf16>
    tpu.vector_store %arg6[%c0_11, %c0_12], %15 {strides = array<i32>} : memref<16x128xbf16, #tpu.memory_space<vmem>>, vector<16x128xbf16>,
    return
  }
  func.func @transform_0(%arg0: i32) -> (i32, i32) {
    %c0_i32 = arith.constant 0 : i32
    %c0_i32_0 = arith.constant 0 : i32
    return %arg0, %c0_i32 : i32, i32
  }
  func.func @transform_1(%arg0: i32) -> (i32, i32) {
    %c0_i32 = arith.constant 0 : i32
    %c0_i32_0 = arith.constant 0 : i32
    %c0_i32_1 = arith.constant 0 : i32
    return %c0_i32, %c0_i32_0 : i32, i32
  }
  func.func @transform_2(%arg0: i32) -> (i32, i32) {
    %c0_i32 = arith.constant 0 : i32
    %c0_i32_0 = arith.constant 0 : i32
    %c0_i32_1 = arith.constant 0 : i32
    return %c0_i32, %c0_i32_0 : i32, i32
  }
  func.func @transform_3(%arg0: i32) -> (i32, i32) {
    %c0_i32 = arith.constant 0 : i32
    %c0_i32_0 = arith.constant 0 : i32
    %c0_i32_1 = arith.constant 0 : i32
    return %c0_i32, %c0_i32_0 : i32, i32
  }
  func.func @transform_4(%arg0: i32) -> (i32, i32) {
    %c0_i32 = arith.constant 0 : i32
    %c0_i32_0 = arith.constant 0 : i32
    %c0_i32_1 = arith.constant 0 : i32
    return %c0_i32, %c0_i32_0 : i32, i32
  }
  func.func @transform_5(%arg0: i32) -> (i32, i32) {
    %c0_i32 = arith.constant 0 : i32
    %c0_i32_0 = arith.constant 0 : i32
    return %arg0, %c0_i32 : i32, i32
  }
}

</mosaic_0001>

<bundles_post_ra>
// kernel: tpu_custom_call.1
= control target key start
LH: loop header
LB: loop body
LE: loop exit
PB: predicated region body
PF: predicated region fallthrough
CT: control target
= control target key end

     0   :  { %10 = vsyncpa [#allocation3], 0  ;;  %s1199_s0 = inlined_call_operand.hbm [shape: f32[16,784], index: 0, kind: input, shape index: {}]   ;;  %s1200_s1 = inlined_call_operand.hbm [shape: bf16[784,128], index: 1, kind: input, shape index: {}]   ;;  %s1201_s2 = inlined_call_operand.vmem [shape: f32[1,128], index: 2, kind: input, shape index: {}]   ;;  %s1202_s3 = inlined_call_operand.hbm [shape: bf16[128,128], index: 3, kind: input, shape index: {}]   ;;  %s1203_s4 = inlined_call_operand.vmem [shape: f32[1,128], index: 4, kind: input, shape index: {}]   ;;  %s1204_s5 = inlined_call_operand.hbm [shape: bf16[16,128], index: 5, kind: output, shape index: {}]  }
   0x1   :  { %11 = vsyncpa [#allocation6], 0 }
   0x2   :  { %12 = vsyncpa [#allocation4], 0  ;;  %s1119_s18 = smov [#allocation5]  }
   0x3   :  { %s30_s19 = sshll.u32 %s1119_s18, 4  ;;  %s31_s19 = int_to_ptr.vmem [resolvable:$true] %s30_s19 }
   0x4   :  { %s1041_s20 = scalar_lea.vmem %s31_s19, 6272  ;;  %p1046_p1 = scmp.lt.s32.totalorder %s31_s19, %s31_s19 }
   0x5   :  { %p1042_p0 = scmp.ne.s32.totalorder %s31_s19, %s1041_s20  ;;  %p1047_p2 = scmp.lt.s32.totalorder %s1041_s20, %s1041_s20 }
   0x7   :  { %p1048_p3 = por %p1047_p2, %p1046_p1 }
   0x9   :  { %p1049_p4 = pnand %p1048_p3, %p1042_p0 }
   0xb   :  { %1052 = shalt.err (!%p1049_p4)
}
   0xc   :  { %s1120_s21 = smov 64   ;;  %s1121_s22 = smov 4  }
   0xd   :  { %36 = dma.hbm_to_vmem [thread:$0]  %s1200_s1, 6272, %s31_s19, [#allocation6], %s1120_s21, %s1120_s21, %s1121_s22  }
   0xe   :  { %s1122_s25 = smov [#allocation2]  }
   0xf   :  { %s18_s26 = sshll.u32 %s1122_s25, 4  ;;  %s19_s26 = int_to_ptr.vmem [resolvable:$true] %s18_s26 }
  0x10   :  { %s1061_s27 = scalar_lea.vmem %s19_s26, 1792  ;;  %p1066_p6 = scmp.lt.s32.totalorder %s19_s26, %s19_s26 }
  0x11   :  { %p1062_p5 = scmp.ne.s32.totalorder %s19_s26, %s1061_s27  ;;  %p1067_p7 = scmp.lt.s32.totalorder %s1061_s27, %s1061_s27 }
  0x13   :  { %p1068_p8 = por %p1067_p7, %p1066_p6 }
  0x15   :  { %p1069_p9 = pnand %p1068_p8, %p1062_p5 }
  0x17   :  { %1072 = shalt.err (!%p1069_p9)
}
  0x18   :  { %s1123_s28 = smov 896   ;;  %s1124_s29 = smov 56  }
  0x19   :  { %24 = dma.hbm_to_vmem [thread:$0]  %s1199_s0, 1792, %s19_s26, [#allocation3], %s1123_s28, %s1123_s28, %s1124_s29  }
  0x1a   :  { %s1125_s7 = smov [#allocation7]  }
  0x1b   :  { %s44_s8 = sshll.u32 %s1125_s7, 4  ;;  %s45_s8 = int_to_ptr.vmem [resolvable:$true] %s44_s8 }
  0x1c   :  { %s1081_s1 = scalar_lea.vmem %s45_s8, 1024  ;;  %p1086_p11 = scmp.lt.s32.totalorder %s45_s8, %s45_s8 }
  0x1d   :  { %p1082_p10 = scmp.ne.s32.totalorder %s45_s8, %s1081_s1  ;;  %p1087_p12 = scmp.lt.s32.totalorder %s1081_s1, %s1081_s1 }
  0x1f   :  { %p1088_p13 = por %p1087_p12, %p1086_p11 }
  0x21   :  { %p1089_p0 = pnand %p1088_p13, %p1082_p10 }
  0x23   :  { %1092 = shalt.err (!%p1089_p0)
}
  0x24   :  { %50 = dma.hbm_to_vmem [thread:$0]  %s1202_s3, 1024, %s45_s8, [#allocation6], %s1120_s21, %s1120_s21, %s1121_s22  }
  0x25   :  { %1113 = dma.done.wait [#allocation3], 1792  }
  0x26   :  { %1114 = vsyncadd [#allocation3], 4294965504 }
  0x27   :  { %1115 = dma.done.wait [#allocation6], 7296  }
  0x28   :  { %1116 = vsyncadd [#allocation6], 4294960000  ;;  %v976_v0 = vld [vmem:[#allocation5 + $0x78] sm:$0xff]   ;;  %v980_v4 = vld [vmem:[#allocation5 + $0x70] sm:$0xff]   ;;  %v1126_v43 = vmov 0.0   ;;  %vm1127_vm0 = vmmov 0  }
  0x29   :  { %v977_v1 = vld [vmem:[#allocation5 + $0x38] sm:$0xff]   ;;  %863 = vmatprep.subr.bf16.mxu0 %v976_v0  ;;  %v981_v5 = vld [vmem:[#allocation5 + $0x30] sm:$0xff]   ;;  %v984_v8 = vld [vmem:[#allocation5 + $0x68] sm:$0xff]   ;;  %vm483_vm1 = vcmask 130048   ;;  %s1128_s12 = smov [#allocation8]  }
  0x2a   :  { %v978_v2 = vld [vmem:[#allocation5 + $0xf8] sm:$0xff]   ;;  %864 = vmatpush3.bf16.msra.mxu0 %v977_v1  ;;  %v982_v6 = vld [vmem:[#allocation5 + $0xf0] sm:$0xff]   ;;  %v985_v9 = vld [vmem:[#allocation5 + $0x28] sm:$0xff]   ;;  %s781_s13 = sshll.u32 %s1128_s12, 4  ;;  %s782_s13 = int_to_ptr.vmem [resolvable:$true] %s781_s13 }
  0x2b   :  { %v979_v3 = vld [vmem:[#allocation5 + $0xb8] sm:$0xff]   ;;  %885 = vmatprep.subr.bf16.mxu1 %v978_v2  ;;  %865 = vmatprep.subr.bf16.mxu0 %v980_v4  ;;  %v983_v7 = vld [vmem:[#allocation5 + $0xb0] sm:$0xff]   ;;  %v986_v10 = vld [vmem:[#allocation5 + $0xe8] sm:$0xff]   ;;  %s1093_s14 = scalar_lea.vmem %s782_s13, 128  ;;  %p1098_p2 = scmp.lt.s32.totalorder %s782_s13, %s782_s13 }
  0x2c   :  { %886 = vmatpush3.bf16.msra.mxu1 %v979_v3  ;;  %v987_v11 = vld [vmem:[#allocation5 + $0xa8] sm:$0xff]   ;;  %v988_v12 = vld [vmem:[#allocation5 + $0x60] sm:$0xff]   ;;  %v992_v16 = vld [vmem:[#allocation5 + $0x58] sm:$0xff]   ;;  %p1094_p1 = scmp.ne.s32.totalorder %s782_s13, %s1093_s14  ;;  %p1099_p3 = scmp.lt.s32.totalorder %s1093_s14, %s1093_s14 }
  0x2d   :  { %887 = vmatprep.subr.bf16.mxu1 %v982_v6  ;;  %v989_v13 = vld [vmem:[#allocation5 + $0x20] sm:$0xff]   ;;  %v993_v17 = vld [vmem:[#allocation5 + $0x18] sm:$0xff]   ;;  %v996_v20 = vld [vmem:[#allocation5 + $0x50] sm:$0xff]  }
  0x2e   :  { %866 = vmatpush3.bf16.msra.mxu0 %v981_v5  ;;  %v990_v14 = vld [vmem:[#allocation5 + $0xe0] sm:$0xff]   ;;  %v994_v18 = vld [vmem:[#allocation5 + $0xd8] sm:$0xff]   ;;  %v997_v21 = vld [vmem:[#allocation5 + $0x10] sm:$0xff]   ;;  %p1100_p4 = por %p1099_p3, %p1098_p2 }
  0x2f   :  { %867 = vmatprep.subr.bf16.mxu0 %v984_v8  ;;  %v991_v15 = vld [vmem:[#allocation5 + $0xa0] sm:$0xff]   ;;  %v995_v19 = vld [vmem:[#allocation5 + $0x98] sm:$0xff]   ;;  %v998_v22 = vld [vmem:[#allocation5 + $0xd0] sm:$0xff]  }
  0x30   :  { %888 = vmatpush3.bf16.msra.mxu1 %v983_v7  ;;  %v999_v23 = vld [vmem:[#allocation5 + $0x90] sm:$0xff]   ;;  %v1000_v24 = vld [vmem:[#allocation5 + $0x48] sm:$0xff]   ;;  %v1004_v28 = vld [vmem:[#allocation5 + $0x40] sm:$0xff]   ;;  %p1101_p5 = pnand %p1100_p4, %p1094_p1 }
  0x31   :  { %889 = vmatprep.subr.bf16.mxu1 %v986_v10  ;;  %v1001_v25 = vld [vmem:[#allocation5 + $0x8] sm:$0xff]   ;;  %v1005_v29 = vld [vmem:[#allocation5] sm:$0xff]   ;;  %v64_v31 = vld [vmem:[#allocation2 + $0x8] sm:$0xff] }
  0x32   :  { %868 = vmatpush3.bf16.msra.mxu0 %v985_v9  ;;  %v1002_v26 = vld [vmem:[#allocation5 + $0xc8] sm:$0xff]   ;;  %v1006_v30 = vld [vmem:[#allocation5 + $0xc0] sm:$0xff]   ;;  %v71_v32 = vld [vmem:[#allocation2 + $0x40] sm:$0xff] }
  0x33   :  { %869 = vmatprep.subr.bf16.mxu0 %v988_v12  ;;  %v1003_v27 = vld [vmem:[#allocation5 + $0x88] sm:$0xff]   ;;  %v78_v33 = vpack.c.bf16 %v71_v32, %v64_v31  ;;  %v1007_v34 = vld [vmem:[#allocation5 + $0x80] sm:$0xff]   ;;  %v63_v35 = vld [vmem:[#allocation2] sm:$0xff] }
  0x34   :  { %890 = vmatpush3.bf16.msra.mxu1 %v987_v11  ;;  %v70_v36 = vld [vmem:[#allocation2 + $0x38] sm:$0xff]  ;;  %v1008_v38 = vld [vmem:[#allocation5 + $0x178] sm:$0xff]   ;;  %v73_v40 = vld [vmem:[#allocation2 + $0x50] sm:$0xff] }
  0x35   :  { %891 = vmatprep.subr.bf16.mxu1 %v990_v14  ;;  %519 = vmatprep.mubr.bf16.mxu0 %v78_v33  ;;  %v77_v37 = vpack.c.bf16 %v70_v36, %v63_v35  ;;  %v66_v39 = vld [vmem:[#allocation2 + $0x18] sm:$0xff]  ;;  %v1009_v42 = vld [vmem:[#allocation5 + $0x138] sm:$0xff]   ;;  %v65_v44 = vld [vmem:[#allocation2 + $0x10] sm:$0xff] }
  0x36   :  { %870 = vmatpush3.bf16.msra.mxu0 %v989_v13  ;;  %v80_v41 = vpack.c.bf16 %v73_v40, %v66_v39  ;;  %v72_v45 = vld [vmem:[#allocation2 + $0x48] sm:$0xff]  ;;  %v1010_v47 = vld [vmem:[#allocation5 + $0x170] sm:$0xff]   ;;  %v1012_v49 = vld [vmem:[#allocation5 + $0x168] sm:$0xff]  }
  0x37   :  { %871 = vmatprep.subr.bf16.mxu0 %v992_v16  ;;  %v79_v46 = vpack.c.bf16 %v72_v45, %v65_v44  ;;  %v1011_v48 = vld [vmem:[#allocation5 + $0x130] sm:$0xff]   ;;  %v1013_v50 = vld [vmem:[#allocation5 + $0x128] sm:$0xff]   ;;  %v1014_v51 = vld [vmem:[#allocation5 + $0x160] sm:$0xff]  }
  0x38   :  { %892 = vmatpush3.bf16.msra.mxu1 %v991_v15  ;;  %560 = vmatprep.mubr.bf16.mxu1 %v80_v41  ;;  %v1015_v52 = vld [vmem:[#allocation5 + $0x120] sm:$0xff]   ;;  %v1016_v53 = vld [vmem:[#allocation5 + $0x158] sm:$0xff]   ;;  %v1018_v55 = vld [vmem:[#allocation5 + $0x150] sm:$0xff]  }
  0x39   :  { %893 = vmatprep.subr.bf16.mxu1 %v994_v18  ;;  %v1017_v54 = vld [vmem:[#allocation5 + $0x118] sm:$0xff]   ;;  %v1024_v56 = vld [vmem:[#allocation5 + $0x180] sm:$0xff]   ;;  %v1019_v58 = vld [vmem:[#allocation5 + $0x110] sm:$0xff]  }
  0x3a   :  { %872 = vmatpush3.bf16.msra.mxu0 %v993_v17  ;;  %v68_v57 = vld [vmem:[#allocation2 + $0x28] sm:$0xff]  ;;  %v1020_v59 = vld [vmem:[#allocation5 + $0x148] sm:$0xff]   ;;  %v75_v60 = vld [vmem:[#allocation2 + $0x60] sm:$0xff] }
  0x3b   :  { %873 = vmatprep.subr.bf16.mxu0 %v996_v20  ;;  %v82_v61 = vpack.c.bf16 %v75_v60, %v68_v57  ;;  %v69_v62 = vld [vmem:[#allocation2 + $0x30] sm:$0xff]  ;;  %v76_v63 = vld [vmem:[#allocation2 + $0x68] sm:$0xff]  ;;  %v1021_v1 = vld [vmem:[#allocation5 + $0x108] sm:$0xff]  }
  0x3c   :  { %894 = vmatpush3.bf16.msra.mxu1 %v995_v19  ;;  %v83_v0 = vpack.c.bf16 %v76_v63, %v69_v62  ;;  %v1022_v2 = vld [vmem:[#allocation5 + $0x140] sm:$0xff]   ;;  %v67_v4 = vld [vmem:[#allocation2 + $0x20] sm:$0xff]  ;;  %v74_v5 = vld [vmem:[#allocation2 + $0x58] sm:$0xff] }
  0x3d   :  { %895 = vmatprep.subr.bf16.mxu1 %v998_v22  ;;  %v1023_v3 = vld [vmem:[#allocation5 + $0x100] sm:$0xff]   ;;  %v81_v6 = vpack.c.bf16 %v74_v5, %v67_v4  ;;  %v1026_v8 = vld [vmem:[#allocation7 + $0x30] sm:$0xff]   ;;  %v1027_v9 = vld [vmem:[#allocation7 + $0x28] sm:$0xff]  }
  0x3e   :  { %874 = vmatpush3.bf16.msra.mxu0 %v997_v21  ;;  %v1025_v7 = vld [vmem:[#allocation7 + $0x38] sm:$0xff]   ;;  %v1028_v10 = vld [vmem:[#allocation7 + $0x20] sm:$0xff]   ;;  %v1030_v12 = vld [vmem:[#allocation7 + $0x10] sm:$0xff]  }
  0x3f   :  { %875 = vmatprep.subr.bf16.mxu0 %v1000_v24  ;;  %v1029_v11 = vld [vmem:[#allocation7 + $0x18] sm:$0xff]   ;;  %v1031_v13 = vld [vmem:[#allocation7 + $0x8] sm:$0xff]   ;;  %v1032_v14 = vld [vmem:[#allocation7] sm:$0xff]  }
  0x40   :  { %896 = vmatpush3.bf16.msra.mxu1 %v999_v23 }
  0x41   :  { %897 = vmatprep.subr.bf16.mxu1 %v1002_v26 }
  0x42   :  { %876 = vmatpush3.bf16.msra.mxu0 %v1001_v25 }
  0x43   :  { %877 = vmatprep.subr.bf16.mxu0 %v1004_v28 }
  0x44   :  { %898 = vmatpush3.bf16.msra.mxu1 %v1003_v27  ;;  %v794_v27 = vld [vmem:[%s1201_s2] ss:$0 sm:$0xff] }
  0x45   :  { %899 = vmatprep.subr.bf16.mxu1 %v1006_v30 }
  0x46   :  { %878 = vmatpush3.bf16.msra.mxu0 %v1005_v29 }
  0x47   :  { %907 = vmatprep.subr.bf16.mxu0 %v1008_v38 }
  0x48   :  { %900 = vmatpush3.bf16.msra.mxu1 %v1007_v34 }
  0x49   :  { %940 = vmatprep.subr.bf16.mxu1 %v1126_v43  ;;  %520 = vmatmul.mubr.bf16.vlgmr.msra.gmra.mxu0 %v77_v37 }
  0x4a   :  { %908 = vmatpush3.bf16.msra.mxu0 %v1009_v42  ;;  %601 = vmatprep.mubr.bf16.mxu0 %v82_v61 }
  0x4b   :  { %561 = vmatmul.mubr.bf16.vlgmr.msra.gmra.mxu1 %v79_v46  ;;  %909 = vmatprep.subr.bf16.mxu0 %v1010_v47 }
  0x4c   :  { %942 = vmatprep.mubr.msk.bf16.mxu1 %vm1127_vm0, %v1126_v43  ;;  %941 = vmatpush3.bf16.msra.mxu1 %v1024_v56 }
  0x4d   :  { %946 = vmatprep.subr.bf16.mxu1 %v1126_v43 }
  0x4e   :  { %910 = vmatpush3.bf16.msra.mxu0 %v1011_v48 }
  0x4f   :  { %911 = vmatprep.subr.bf16.mxu0 %v1012_v49 }
  0x52   :  { %912 = vmatpush3.bf16.msra.mxu0 %v1013_v50  ;;  %v845_v50 = vld [vmem:[%s1203_s4] ss:$0 sm:$0xff] }
  0x53   :  { %913 = vmatprep.subr.bf16.mxu0 %v1014_v51  ;;  %943 = vmatmul.mubr.msk.bf16.vlgmr.msra.gmra.mxu1 %vm483_vm1, %v83_v0 }
  0x54   :  { %962 = vmatprep.mubr.msk.bf16.mxu1 %vm1127_vm0, %v1126_v43  ;;  %947 = vmatpush3.bf16.msra.mxu1 %v1025_v7 }
  0x55   :  { %948 = vmatprep.subr.bf16.mxu1 %v1126_v43 }
  0x56   :  { %914 = vmatpush3.bf16.msra.mxu0 %v1015_v52 }
  0x57   :  { %915 = vmatprep.subr.bf16.mxu0 %v1016_v53 }
  0x58   :  { %949 = vmatpush3.bf16.msra.mxu1 %v1026_v8 }
  0x59   :  { %950 = vmatprep.subr.bf16.mxu1 %v1126_v43 }
  0x5a   :  { %916 = vmatpush3.bf16.msra.mxu0 %v1017_v54 }
  0x5b   :  { %917 = vmatprep.subr.bf16.mxu0 %v1018_v55 }
  0x5c   :  { %951 = vmatpush3.bf16.msra.mxu1 %v1027_v9 }
  0x5d   :  { %952 = vmatprep.subr.bf16.mxu1 %v1126_v43 }
  0x5e   :  { %918 = vmatpush3.bf16.msra.mxu0 %v1019_v58 }
  0x5f   :  { %919 = vmatprep.subr.bf16.mxu0 %v1020_v59 }
  0x60   :  { %953 = vmatpush3.bf16.msra.mxu1 %v1028_v10 }
  0x61   :  { %954 = vmatprep.subr.bf16.mxu1 %v1126_v43 }
  0x62   :  { %920 = vmatpush3.bf16.msra.mxu0 %v1021_v1 }
  0x63   :  { %921 = vmatprep.subr.bf16.mxu0 %v1022_v2 }
  0x64   :  { %955 = vmatpush3.bf16.msra.mxu1 %v1029_v11 }
  0x65   :  { %956 = vmatprep.subr.bf16.mxu1 %v1126_v43 }
  0x66   :  { %922 = vmatpush3.bf16.msra.mxu0 %v1023_v3 }
  0x68   :  { %957 = vmatpush3.bf16.msra.mxu1 %v1030_v12 }
  0x69   :  { %602 = vmatmul.mubr.bf16.vlgmr.msra.gmra.mxu0 %v81_v6  ;;  %958 = vmatprep.subr.bf16.mxu1 %v1126_v43 }
  0x6c   :  { %959 = vmatpush3.bf16.msra.mxu1 %v1031_v13 }
  0x6d   :  { %960 = vmatprep.subr.bf16.mxu1 %v1126_v43 }
  0x70   :  { %961 = vmatpush3.bf16.msra.mxu1 %v1032_v14 }
 0x109   :  { %v879_v18 = vpop.f32.mrf.mxu0 }
 0x10b   :  { %v901_v15 = vpop.f32.mrf.mxu1  ;;  %v880_v20 = vpop.f32.mrf.mxu0 }
 0x10c   :  { %v881_v26 = vadd.f32 %v880_v20, %v879_v18 }
 0x10d   :  { %v902_v16 = vpop.f32.mrf.mxu1  ;;  %v882_v23 = vpop.f32.mrf.mxu0 }
 0x10e   :  { %v522_v29 = vadd.f32 %v881_v26, %v794_v27  ;;  %v903_v30 = vadd.f32 %v902_v16, %v901_v15 }
 0x10f   :  { %v904_v17 = vpop.f32.mrf.mxu1  ;;  %v883_v28 = vpop.f32.mrf.mxu0 }
 0x110   :  { %v884_v31 = vadd.f32 %v883_v28, %v882_v23  ;;  %v563_v34 = vadd.f32 %v903_v30, %v522_v29 }
 0x111   :  { %v905_v19 = vpop.f32.mrf.mxu1 }
 0x112   :  { %v525_v35 = vadd.f32 %v884_v31, %v794_v27  ;;  %v906_v36 = vadd.f32 %v905_v19, %v904_v17 }
 0x113   :  { %v644_v21 = vpop.f32.mrf.mxu1 }
 0x114   :  { %v566_v41 = vadd.f32 %v906_v36, %v525_v35 }
 0x115   :  { %v944_v22 = vpop.f32.mrf.mxu1 }
 0x117   :  { %v647_v24 = vpop.f32.mrf.mxu1 }
 0x119   :  { %v945_v25 = vpop.f32.mrf.mxu1 }
 0x129   :  { %v923_v32 = vpop.f32.mrf.mxu0 }
 0x12b   :  { %v924_v33 = vpop.f32.mrf.mxu0 }
 0x12c   :  { %v925_v37 = vadd.f32 %v924_v33, %v923_v32 }
 0x12d   :  { %v926_v38 = vpop.f32.mrf.mxu0 }
 0x12e   :  { %v604_v39 = vadd.f32 %v925_v37, %v563_v34 }
 0x12f   :  { %v927_v40 = vpop.f32.mrf.mxu0 }
 0x130   :  { %v928_v42 = vadd.f32 %v927_v40, %v926_v38  ;;  %v645_v43 = vadd.f32 %v644_v21, %v604_v39 }
 0x132   :  { %v607_v44 = vadd.f32 %v928_v42, %v566_v41  ;;  %v651_v46 = vmax.f32 %v645_v43, 0.0 }
 0x134   :  { %v648_v45 = vadd.f32 %v647_v24, %v607_v44 }
 0x136   :  { %v652_v47 = vmax.f32 %v648_v45, 0.0 }
 0x138   :  { %v653_v48 = vpack.c.bf16 %v652_v47, %v651_v46 }
 0x13a   :  { %963 = vmatmul.mubr.bf16.vlgmr.msra.gmra.mxu1 %v653_v48 }
 0x1fa   :  { %v759_v49 = vpop.f32.mrf.mxu1 }
 0x1fb   :  { %v760_v53 = vadd.f32 %v845_v50, %v759_v49 }
 0x1fc   :  { %v964_v51 = vpop.f32.mrf.mxu1 }
 0x1fe   :  { %v762_v52 = vpop.f32.mrf.mxu1 }
 0x1ff   :  { %v763_v54 = vadd.f32 %v845_v50, %v762_v52 }
 0x200   :  { %v965_v55 = vpop.f32.mrf.mxu1 }
 0x201   :  { %v861_v56 = vpack.c.bf16 %v763_v54, %v760_v53 }
 0x203   :  { %862 = vst [vmem:[#allocation8] sm:$0xff] %v861_v56  }
 0x204   :  { %1104 = shalt.err (!%p1101_p5)
}
 0x205   :  { %787 = dma.vmem_to_hbm [thread:$0]  %s782_s13, 128, %s1204_s5, [#allocation4], %s1120_s21, %s1120_s21, %s1121_s22  }
 0x206   :  { %1117 = dma.done.wait [#allocation4], 128  }
 0x207   :  { %1118 = vsyncadd [#allocation4], 4294967168 }
 0x208   :  { %791 = vsyncpa [#allocation3], 1 }
 0x209   :  { %792 = vsyncpa [#allocation6], 1 }
 0x20a   :  { %793 = vsyncpa [#allocation4], 1 }

</bundles_post_ra>
